<compile_context>
chip_gen: v7x
topology: tpu7x:2x2x1
jax: 0.10.0
libtpu: 0.0.40
codegen_flags: <defaults>
</compile_context>

<pallas_src>
import jax
import jax.numpy as jnp
from jax.experimental import pallas as pl
from jax.experimental.pallas import tpu as pltpu

LATENT_DIM = 32
N_CLASSES = 10
IN_DIM = 784          # 1 * 28 * 28 (nn.Flatten)
IN_PAD = 896          # 7 * 128, lane-aligned K for the first matmul
H1 = 512
H2 = 256
OUT_LANES = 128       # lane-dense output slab: [0:32] latent, [32:42] logits


def _round_up(x, m):
    return ((x + m - 1) // m) * m


def mnist_encoder_kernel(x_ref, w1_ref, b1_ref, w2_ref, b2_ref,
                         wo_ref, bo_ref, out_ref):
    # x: [TILE_B, 896] bf16 ; weights bf16 ; accumulation and biases f32.
    h1 = jnp.dot(x_ref[...], w1_ref[...],
                 preferred_element_type=jnp.float32) + b1_ref[...]
    h1 = jnp.maximum(h1, 0.0).astype(jnp.bfloat16)             # [TILE_B, 512]

    h2 = jnp.dot(h1, w2_ref[...],
                 preferred_element_type=jnp.float32) + b2_ref[...]
    h2 = jnp.maximum(h2, 0.0).astype(jnp.bfloat16)             # [TILE_B, 256]

    # Fused latent + folded-classifier matmul: wo[:, 0:32] = W3,
    # wo[:, 32:42] = W3 @ Wc  ->  one lane-dense [TILE_B, 128] store.
    out_ref[...] = jnp.dot(h2, wo_ref[...],
                           preferred_element_type=jnp.float32) + bo_ref[...]


def prep_params(params):
    """One-time prep of PyTorch-layout params (weight (out,in), bias (out,))."""
    (w1, b1), (w2, b2), (w3, b3), (wc, bc) = params
    w1 = jnp.asarray(w1, jnp.float32); b1 = jnp.asarray(b1, jnp.float32)
    w2 = jnp.asarray(w2, jnp.float32); b2 = jnp.asarray(b2, jnp.float32)
    w3 = jnp.asarray(w3, jnp.float32); b3 = jnp.asarray(b3, jnp.float32)
    wc = jnp.asarray(wc, jnp.float32); bc = jnp.asarray(bc, jnp.float32)

    # Linear(784,512): (512,784) -> (896,512) bf16, K zero-padded to 896.
    w1p = jnp.zeros((IN_PAD, H1), jnp.float32).at[:IN_DIM].set(w1.T)
    w1p = w1p.astype(jnp.bfloat16)
    b1p = b1.reshape(1, H1)

    # Linear(512,256): (256,512) -> (512,256) bf16.
    w2p = w2.T.astype(jnp.bfloat16)
    b2p = b2.reshape(1, H2)

    # Latent layer + folded classifier -> single (256,128) lane-dense matmul.
    w3t = w3.T                                  # (256, 32)
    wct = wc.T                                  # (32, 10)
    wo = jnp.zeros((H2, OUT_LANES), jnp.float32)
    wo = wo.at[:, :LATENT_DIM].set(w3t)
    wo = wo.at[:, LATENT_DIM:LATENT_DIM + N_CLASSES].set(w3t @ wct)
    wo = wo.astype(jnp.bfloat16)

    bo = jnp.zeros((1, OUT_LANES), jnp.float32)
    bo = bo.at[0, :LATENT_DIM].set(b3)
    bo = bo.at[0, LATENT_DIM:LATENT_DIM + N_CLASSES].set(b3 @ wct + bc)

    return (w1p, b1p, w2p, b2p, wo, bo)


@jax.jit
def mnist_encoder_forward(x_nchw, prepped):
    """x_nchw: [B,1,28,28] f32. Returns (logits [B,10] f32, latent [B,32] f32)."""
    B = x_nchw.shape[0]
    w1p, b1p, w2p, b2p, wop, bop = prepped

    # MXU-sized batch tile when the batch allows it (256 rows on v6e/v7x, a
    # multiple of 128 for v5e); otherwise a single 8-aligned tile.
    tile_b = 256 if B >= 256 else _round_up(B, 8)
    b_pad = _round_up(B, tile_b)
    num_tiles = b_pad // tile_b

    # nn.Flatten() + cast to bf16 + pad batch / K once in the wrapper.
    x_flat = x_nchw.reshape(B, IN_DIM).astype(jnp.bfloat16)
    x_pad = jnp.zeros((b_pad, IN_PAD), jnp.bfloat16).at[:B, :IN_DIM].set(x_flat)

    out = pl.pallas_call(
        mnist_encoder_kernel,
        out_shape=jax.ShapeDtypeStruct((b_pad, OUT_LANES), jnp.float32),
        grid=(num_tiles,),
        in_specs=[
            pl.BlockSpec((tile_b, IN_PAD), lambda i: (i, 0)),    # x batch tile
            pl.BlockSpec((IN_PAD, H1), lambda i: (0, 0)),        # w1 (resident)
            pl.BlockSpec((1, H1), lambda i: (0, 0)),             # b1 (resident)
            pl.BlockSpec((H1, H2), lambda i: (0, 0)),            # w2 (resident)
            pl.BlockSpec((1, H2), lambda i: (0, 0)),             # b2 (resident)
            pl.BlockSpec((H2, OUT_LANES), lambda i: (0, 0)),     # w_out (resident)
            pl.BlockSpec((1, OUT_LANES), lambda i: (0, 0)),      # b_out (resident)
        ],
        out_specs=pl.BlockSpec((tile_b, OUT_LANES), lambda i: (i, 0)),
        compiler_params=pltpu.CompilerParams(
            dimension_semantics=("parallel",)),                  # 2 TCs on v7x
    )(x_pad, w1p, b1p, w2p, b2p, wop, bop)

    latent = out[:B, :LATENT_DIM]
    logits = out[:B, LATENT_DIM:LATENT_DIM + N_CLASSES]
    return logits, latent


def init_params(key):
    """Deterministic init, PyTorch nn.Linear conventions: W (out,in), b (out,)."""
    def linear(k, out_dim, in_dim):
        kw, kb = jax.random.split(k)
        bound = 1.0 / jnp.sqrt(in_dim)
        w = jax.random.uniform(kw, (out_dim, in_dim), jnp.float32, -bound, bound)
        b = jax.random.uniform(kb, (out_dim,), jnp.float32, -bound, bound)
        return w, b

    k1, k2, k3, k4 = jax.random.split(key, 4)
    return (
        linear(k1, H1, IN_DIM),             # Linear(784, 512)
        linear(k2, H2, H1),                 # Linear(512, 256)
        linear(k3, LATENT_DIM, H2),         # Linear(256, 32)
        linear(k4, N_CLASSES, LATENT_DIM),  # classifier Linear(32, 10)
    )


def _reference(x, params):
    """Plain-JAX f32 reference matching the PyTorch forward."""
    (w1, b1), (w2, b2), (w3, b3), (wc, bc) = params
    xf = x.reshape(x.shape[0], -1)
    r1 = jnp.maximum(xf @ w1.T + b1, 0.0)
    r2 = jnp.maximum(r1 @ w2.T + b2, 0.0)
    latent = r2 @ w3.T + b3
    logits = latent @ wc.T + bc
    return logits, latent


if __name__ == "__main__":
    key = jax.random.PRNGKey(0)
    k_params, k_x = jax.random.split(key)

    params = init_params(k_params)
    prepped = prep_params(params)               # one-time prep (hoisted)

    # Small batch (single tile) and a >256 batch (exercises the grid + padding).
    for B in (8, 384):
        kx = jax.random.fold_in(k_x, B)
        x = jax.random.normal(kx, (B, 1, 28, 28), dtype=jnp.float32)

        logits, latent = mnist_encoder_forward(x, prepped)
        jax.block_until_ready((logits, latent))

        logits_ref, latent_ref = _reference(x, params)
        assert logits.shape == (B, N_CLASSES) and latent.shape == (B, LATENT_DIM)
        # bf16 weights/activations -> loosened tolerance vs. f32 reference.
        assert jnp.allclose(logits, logits_ref, atol=2e-2, rtol=2e-2), (
            "logits mismatch, max abs err "
            f"{float(jnp.max(jnp.abs(logits - logits_ref)))}")
        assert jnp.allclose(latent, latent_ref, atol=2e-2, rtol=2e-2), (
            "latent mismatch, max abs err "
            f"{float(jnp.max(jnp.abs(latent - latent_ref)))}")

    print("KERNEL_OK")
</pallas_src>

<mosaic_0001>
module attributes {stable_mosaic.version = 11 : i64} {
  func.func @mnist_encoder_kernel(%arg0: i32, %arg1: memref<8x896xbf16, #tpu.memory_space<vmem>>, %arg2: memref<896x512xbf16, #tpu.memory_space<vmem>>, %arg3: memref<1x512xf32, #tpu.memory_space<vmem>>, %arg4: memref<512x256xbf16, #tpu.memory_space<vmem>>, %arg5: memref<1x256xf32, #tpu.memory_space<vmem>>, %arg6: memref<256x128xbf16, #tpu.memory_space<vmem>>, %arg7: memref<1x128xf32, #tpu.memory_space<vmem>>, %arg8: memref<8x128xf32, #tpu.memory_space<vmem>>) attributes {dimension_semantics = [#tpu.dimension_semantics<parallel>], iteration_bounds = array<i64: 1>, scalar_prefetch = 0 : i64, scratch_operands = 0 : i64, tpu.core_type = #tpu.core_type<tc>, window_params = [{transform_indices = @transform_0, window_bounds = array<i64: 8, 896>}, {pipeline_mode = #tpu.pipeline_mode<synchronous>, transform_indices = @transform_1, window_bounds = array<i64: 896, 512>}, {pipeline_mode = #tpu.pipeline_mode<synchronous>, transform_indices = @transform_2, window_bounds = array<i64: 1, 512>}, {pipeline_mode = #tpu.pipeline_mode<synchronous>, transform_indices = @transform_3, window_bounds = array<i64: 512, 256>}, {pipeline_mode = #tpu.pipeline_mode<synchronous>, transform_indices = @transform_4, window_bounds = array<i64: 1, 256>}, {pipeline_mode = #tpu.pipeline_mode<synchronous>, transform_indices = @transform_5, window_bounds = array<i64: 256, 128>}, {pipeline_mode = #tpu.pipeline_mode<synchronous>, transform_indices = @transform_6, window_bounds = array<i64: 1, 128>}, {transform_indices = @transform_7, window_bounds = array<i64: 8, 128>}]} {
    %c0 = arith.constant 0 : index
    %c0_0 = arith.constant 0 : index
    %0 = vector.load %arg1[%c0, %c0_0] : memref<8x896xbf16, #tpu.memory_space<vmem>>, vector<8x896xbf16>
    %c0_1 = arith.constant 0 : index
    %c0_2 = arith.constant 0 : index
    %1 = vector.load %arg2[%c0_1, %c0_2] : memref<896x512xbf16, #tpu.memory_space<vmem>>, vector<896x512xbf16>
    %cst = arith.constant dense<0.000000e+00> : vector<8x512xf32>
    %2 = tpu.matmul %0, %1, %cst {dimension_numbers = #tpu.dot_dimension_numbers<[1], [0], [0], [1], [0, 0, 1, 1], [], []>} : vector<8x896xbf16>, vector<896x512xbf16>, vector<8x512xf32> -> vector<8x512xf32>
    %c0_3 = arith.constant 0 : index
    %c0_4 = arith.constant 0 : index
    %3 = vector.load %arg3[%c0_3, %c0_4] : memref<1x512xf32, #tpu.memory_space<vmem>>, vector<1x512xf32>
    %4 = vector.broadcast %3 : vector<1x512xf32> to vector<8x512xf32>
    %5 = arith.addf %2, %4 : vector<8x512xf32>
    %cst_5 = arith.constant 0.000000e+00 : f32
    %6 = vector.broadcast %cst_5 : f32 to vector<8x512xf32>
    %7 = arith.maximumf %5, %6 : vector<8x512xf32>
    %8 = arith.truncf %7 : vector<8x512xf32> to vector<8x512xbf16>
    %c0_6 = arith.constant 0 : index
    %c0_7 = arith.constant 0 : index
    %9 = vector.load %arg4[%c0_6, %c0_7] : memref<512x256xbf16, #tpu.memory_space<vmem>>, vector<512x256xbf16>
    %cst_8 = arith.constant dense<0.000000e+00> : vector<8x256xf32>
    %10 = tpu.matmul %8, %9, %cst_8 {dimension_numbers = #tpu.dot_dimension_numbers<[1], [0], [0], [1], [0, 0, 1, 1], [], []>} : vector<8x512xbf16>, vector<512x256xbf16>, vector<8x256xf32> -> vector<8x256xf32>
    %c0_9 = arith.constant 0 : index
    %c0_10 = arith.constant 0 : index
    %11 = vector.load %arg5[%c0_9, %c0_10] : memref<1x256xf32, #tpu.memory_space<vmem>>, vector<1x256xf32>
    %12 = vector.broadcast %11 : vector<1x256xf32> to vector<8x256xf32>
    %13 = arith.addf %10, %12 : vector<8x256xf32>
    %cst_11 = arith.constant 0.000000e+00 : f32
    %14 = vector.broadcast %cst_11 : f32 to vector<8x256xf32>
    %15 = arith.maximumf %13, %14 : vector<8x256xf32>
    %16 = arith.truncf %15 : vector<8x256xf32> to vector<8x256xbf16>
    %c0_12 = arith.constant 0 : index
    %c0_13 = arith.constant 0 : index
    %17 = vector.load %arg6[%c0_12, %c0_13] : memref<256x128xbf16, #tpu.memory_space<vmem>>, vector<256x128xbf16>
    %cst_14 = arith.constant dense<0.000000e+00> : vector<8x128xf32>
    %18 = tpu.matmul %16, %17, %cst_14 {dimension_numbers = #tpu.dot_dimension_numbers<[1], [0], [0], [1], [0, 0, 1, 1], [], []>} : vector<8x256xbf16>, vector<256x128xbf16>, vector<8x128xf32> -> vector<8x128xf32>
    %c0_15 = arith.constant 0 : index
    %c0_16 = arith.constant 0 : index
    %19 = vector.load %arg7[%c0_15, %c0_16] : memref<1x128xf32, #tpu.memory_space<vmem>>, vector<1x128xf32>
    %20 = vector.broadcast %19 : vector<1x128xf32> to vector<8x128xf32>
    %21 = arith.addf %18, %20 : vector<8x128xf32>
    %c0_17 = arith.constant 0 : index
    %c0_18 = arith.constant 0 : index
    %22 = vector.load %arg8[%c0_17, %c0_18] : memref<8x128xf32, #tpu.memory_space<vmem>>, vector<8x128xf32>
    tpu.vector_store %arg8[%c0_17, %c0_18], %21 {strides = array<i32>} : memref<8x128xf32, #tpu.memory_space<vmem>>, vector<8x128xf32>,
    return
  }
  func.func @transform_0(%arg0: i32) -> (i32, i32) {
    %c0_i32 = arith.constant 0 : i32
    %c0_i32_0 = arith.constant 0 : i32
    return %arg0, %c0_i32 : i32, i32
  }
  func.func @transform_1(%arg0: i32) -> (i32, i32) {
    %c0_i32 = arith.constant 0 : i32
    %c0_i32_0 = arith.constant 0 : i32
    %c0_i32_1 = arith.constant 0 : i32
    return %c0_i32, %c0_i32_0 : i32, i32
  }
  func.func @transform_2(%arg0: i32) -> (i32, i32) {
    %c0_i32 = arith.constant 0 : i32
    %c0_i32_0 = arith.constant 0 : i32
    %c0_i32_1 = arith.constant 0 : i32
    return %c0_i32, %c0_i32_0 : i32, i32
  }
  func.func @transform_3(%arg0: i32) -> (i32, i32) {
    %c0_i32 = arith.constant 0 : i32
    %c0_i32_0 = arith.constant 0 : i32
    %c0_i32_1 = arith.constant 0 : i32
    return %c0_i32, %c0_i32_0 : i32, i32
  }
  func.func @transform_4(%arg0: i32) -> (i32, i32) {
    %c0_i32 = arith.constant 0 : i32
    %c0_i32_0 = arith.constant 0 : i32
    %c0_i32_1 = arith.constant 0 : i32
    return %c0_i32, %c0_i32_0 : i32, i32
  }
  func.func @transform_5(%arg0: i32) -> (i32, i32) {
    %c0_i32 = arith.constant 0 : i32
    %c0_i32_0 = arith.constant 0 : i32
    %c0_i32_1 = arith.constant 0 : i32
    return %c0_i32, %c0_i32_0 : i32, i32
  }
  func.func @transform_6(%arg0: i32) -> (i32, i32) {
    %c0_i32 = arith.constant 0 : i32
    %c0_i32_0 = arith.constant 0 : i32
    %c0_i32_1 = arith.constant 0 : i32
    return %c0_i32, %c0_i32_0 : i32, i32
  }
  func.func @transform_7(%arg0: i32) -> (i32, i32) {
    %c0_i32 = arith.constant 0 : i32
    %c0_i32_0 = arith.constant 0 : i32
    return %arg0, %c0_i32 : i32, i32
  }
}

</mosaic_0001>

<bundles_post_ra>
// kernel: mnist_encoder_forward.1
= control target key start
LH: loop header
LB: loop body
LE: loop exit
PB: predicated region body
PF: predicated region fallthrough
CT: control target
= control target key end

     0   :  { %12 = vsyncpa [#allocation3], 0  ;;  %s3669_s0 = inlined_call_operand.vmem [shape: bf16[8,896], index: 0, kind: input, shape index: {}]   ;;  %s3670_s1 = inlined_call_operand.hbm [shape: bf16[896,512], index: 1, kind: input, shape index: {}]   ;;  %s3671_s2 = inlined_call_operand.vmem [shape: f32[1,512], index: 2, kind: input, shape index: {}]   ;;  %s3672_s3 = inlined_call_operand.vmem [shape: bf16[512,256], index: 3, kind: input, shape index: {}]   ;;  %s3673_s4 = inlined_call_operand.vmem [shape: f32[1,256], index: 4, kind: input, shape index: {}]   ;;  %s3674_s5 = inlined_call_operand.hbm [shape: bf16[256,128], index: 5, kind: input, shape index: {}]   ;;  %s3675_s6 = inlined_call_operand.vmem [shape: f32[1,128], index: 6, kind: input, shape index: {}]   ;;  %s3676_s7 = inlined_call_operand.vmem [shape: f32[8,128], index: 7, kind: output, shape index: {}]  }
   0x1   :  { %13 = vsyncpa [#allocation5], 0  ;;  %s3326_s24 = smov [#allocation2]   ;;  %s3278_s28 = scalar_lea.hbm %s3670_s1, 28672 }
   0x2   :  { %s21_s25 = sshll.u32 %s3326_s24, 4  ;;  %p3279_p0 = scmp.ne.s32.totalorder %s3670_s1, %s3278_s28  ;;  %s22_s25 = int_to_ptr.vmem [resolvable:$true] %s21_s25 }
   0x3   :  { %p3282_p1 = scmp.lt.u32.totalorder %s3278_s28, %s3670_s1 }
   0x5   :  { %p3284_p2 = pnand %p3282_p1, %p3279_p0 }
   0x7   :  { %3287 = shalt.err (!%p3284_p2)
}
   0x8   :  { %s3288_s10 = scalar_lea.vmem %s22_s25, 28672  ;;  %p3293_p4 = scmp.lt.s32.totalorder %s22_s25, %s22_s25 }
   0x9   :  { %p3289_p3 = scmp.ne.s32.totalorder %s22_s25, %s3288_s10  ;;  %p3294_p5 = scmp.lt.s32.totalorder %s3288_s10, %s3288_s10 }
   0xb   :  { %p3295_p6 = por %p3294_p5, %p3293_p4 }
   0xd   :  { %p3296_p7 = pnand %p3295_p6, %p3289_p3 }
   0xf   :  { %3299 = shalt.err (!%p3296_p7)
}
  0x10   :  { %s3327_s11 = smov 256   ;;  %s3328_s12 = smov 16  }
  0x11   :  { %27 = dma.hbm_to_vmem [thread:$0]  %s3670_s1, 28672, %s22_s25, [#allocation3], %s3327_s11, %s3327_s11, %s3328_s12  }
  0x12   :  { %s3329_s15 = smov [#allocation4]   ;;  %s3300_s19 = scalar_lea.hbm %s3674_s5, 2048 }
  0x13   :  { %s39_s16 = sshll.u32 %s3329_s15, 4  ;;  %p3301_p8 = scmp.ne.s32.totalorder %s3674_s5, %s3300_s19  ;;  %s40_s16 = int_to_ptr.vmem [resolvable:$true] %s39_s16 }
  0x14   :  { %p3304_p9 = scmp.lt.u32.totalorder %s3300_s19, %s3674_s5 }
  0x16   :  { %p3306_p10 = pnand %p3304_p9, %p3301_p8 }
  0x18   :  { %3309 = shalt.err (!%p3306_p10)
}
  0x19   :  { %s3310_s24 = scalar_lea.vmem %s40_s16, 2048  ;;  %p3315_p12 = scmp.lt.s32.totalorder %s40_s16, %s40_s16 }
  0x1a   :  { %p3311_p11 = scmp.ne.s32.totalorder %s40_s16, %s3310_s24  ;;  %p3316_p13 = scmp.lt.s32.totalorder %s3310_s24, %s3310_s24 }
  0x1c   :  { %p3317_p0 = por %p3316_p13, %p3315_p12 }
  0x1e   :  { %p3318_p1 = pnand %p3317_p0, %p3311_p11 }
  0x20   :  { %3321 = shalt.err (!%p3318_p1)
}
  0x21   :  { %s3330_s1 = smov 64   ;;  %s3331_s25 = smov 4  }
  0x22   :  { %45 = dma.hbm_to_vmem [thread:$0]  %s3674_s5, 2048, %s40_s16, [#allocation5], %s3330_s1, %s3330_s1, %s3331_s25  }
  0x23   :  { %3322 = dma.done.wait [#allocation3], 28672  }
  0x24   :  { %3323 = vsyncadd [#allocation3], 4294938624 }
  0x25   :  { %3324 = dma.done.wait [#allocation5], 2048  }
  0x26   :  { %3325 = vsyncadd [#allocation5], 4294965248  ;;  %v2823_v0 = vld [vmem:[#allocation2 + $0x4] ss:$16 sps:$4 sm:$0xff]   ;;  %v2827_v2 = vld [vmem:[#allocation2] ss:$16 sps:$4 sm:$0xff]  }
  0x27   :  { %v2825_v1 = vld [vmem:[#allocation2 + $0x204] ss:$16 sps:$4 sm:$0xff]   ;;  %1450 = vmatprep.subr.bf16.mxu1 %v2823_v0  ;;  %v2828_v3 = vld [vmem:[#allocation2 + $0x200] ss:$16 sps:$4 sm:$0xff]   ;;  %v56_v48 = vld [vmem:[%s3669_s0 + $0x8] sm:$0xff] }
  0x28   :  { %1491 = vmatprep.subr.bf16.mxu0 %v2825_v1  ;;  %v2829_v4 = vld [vmem:[#allocation2 + $0x24] ss:$16 sps:$4 sm:$0xff]   ;;  %1451 = vmatpush1.bf16.msra.mxu1 %v2827_v2  ;;  %v2833_v6 = vld [vmem:[#allocation2 + $0x20] ss:$16 sps:$4 sm:$0xff]   ;;  %v3405_v51 = vcombine.high %v56_v48, %v56_v48 }
  0x29   :  { %1492 = vmatpush1.bf16.msra.mxu0 %v2828_v3  ;;  %v2831_v5 = vld [vmem:[#allocation2 + $0x224] ss:$16 sps:$4 sm:$0xff]   ;;  %1452 = vmatprep.subr.bf16.mxu1 %v2829_v4  ;;  %v2834_v7 = vld [vmem:[#allocation2 + $0x220] ss:$16 sps:$4 sm:$0xff]  }
  0x2a   :  { %1493 = vmatprep.subr.bf16.mxu0 %v2831_v5  ;;  %v2835_v8 = vld [vmem:[#allocation2 + $0x44] ss:$16 sps:$4 sm:$0xff]   ;;  %v2839_v10 = vld [vmem:[#allocation2 + $0x40] ss:$16 sps:$4 sm:$0xff]   ;;  %1523 = vmatprep.mubr.bf16.mxu0 %v3405_v51  ;;  %v2928_v5 = vld [vmem:[#allocation2 + $0xc] ss:$16 sps:$4 sm:$0xff]  }
  0x2b   :  { %v2837_v9 = vld [vmem:[#allocation2 + $0x244] ss:$16 sps:$4 sm:$0xff]   ;;  %v2840_v11 = vld [vmem:[#allocation2 + $0x240] ss:$16 sps:$4 sm:$0xff]  }
  0x2c   :  { %1453 = vmatpush1.bf16.msra.mxu1 %v2833_v6  ;;  %v2841_v12 = vld [vmem:[#allocation2 + $0x64] ss:$16 sps:$4 sm:$0xff]   ;;  %v2845_v14 = vld [vmem:[#allocation2 + $0x60] ss:$16 sps:$4 sm:$0xff]  }
  0x2d   :  { %1494 = vmatpush1.bf16.msra.mxu0 %v2834_v7  ;;  %1454 = vmatprep.subr.bf16.mxu1 %v2835_v8  ;;  %v2843_v13 = vld [vmem:[#allocation2 + $0x264] ss:$16 sps:$4 sm:$0xff]   ;;  %v2846_v15 = vld [vmem:[#allocation2 + $0x260] ss:$16 sps:$4 sm:$0xff]   ;;  %v3411_v7 = vcombine.low %v56_v48, %v56_v48 }
  0x2e   :  { %1495 = vmatprep.subr.bf16.mxu0 %v2837_v9  ;;  %v2847_v16 = vld [vmem:[#allocation2 + $0x84] ss:$16 sps:$4 sm:$0xff]   ;;  %v2851_v18 = vld [vmem:[#allocation2 + $0x80] ss:$16 sps:$4 sm:$0xff]   ;;  %v2926_v9 = vld [vmem:[#allocation2 + $0x8] ss:$16 sps:$4 sm:$0xff]  }
  0x2f   :  { %v2849_v17 = vld [vmem:[#allocation2 + $0x284] ss:$16 sps:$4 sm:$0xff]   ;;  %v2852_v19 = vld [vmem:[#allocation2 + $0x280] ss:$16 sps:$4 sm:$0xff]  }
  0x30   :  { %1455 = vmatpush1.bf16.msra.mxu1 %v2839_v10  ;;  %v2853_v20 = vld [vmem:[#allocation2 + $0xa4] ss:$16 sps:$4 sm:$0xff]   ;;  %v2857_v22 = vld [vmem:[#allocation2 + $0xa0] ss:$16 sps:$4 sm:$0xff]  }
  0x31   :  { %1496 = vmatpush1.bf16.msra.mxu0 %v2840_v11  ;;  %1456 = vmatprep.subr.bf16.mxu1 %v2841_v12  ;;  %v2855_v21 = vld [vmem:[#allocation2 + $0x2a4] ss:$16 sps:$4 sm:$0xff]   ;;  %v2858_v23 = vld [vmem:[#allocation2 + $0x2a0] ss:$16 sps:$4 sm:$0xff]   ;;  %v2934_v11 = vld [vmem:[#allocation2 + $0x2c] ss:$16 sps:$4 sm:$0xff]  }
  0x32   :  { %1497 = vmatprep.subr.bf16.mxu0 %v2843_v13  ;;  %v2859_v24 = vld [vmem:[#allocation2 + $0xc4] ss:$16 sps:$4 sm:$0xff]   ;;  %v2863_v26 = vld [vmem:[#allocation2 + $0xc0] ss:$16 sps:$4 sm:$0xff]   ;;  %v2932_v13 = vld [vmem:[#allocation2 + $0x28] ss:$16 sps:$4 sm:$0xff]  }
  0x33   :  { %v2861_v25 = vld [vmem:[#allocation2 + $0x2c4] ss:$16 sps:$4 sm:$0xff]   ;;  %v2864_v27 = vld [vmem:[#allocation2 + $0x2c0] ss:$16 sps:$4 sm:$0xff]  }
  0x34   :  { %1457 = vmatpush1.bf16.msra.mxu1 %v2845_v14  ;;  %v2865_v28 = vld [vmem:[#allocation2 + $0xe4] ss:$16 sps:$4 sm:$0xff]   ;;  %v2869_v30 = vld [vmem:[#allocation2 + $0xe0] ss:$16 sps:$4 sm:$0xff]  }
  0x35   :  { %1498 = vmatpush1.bf16.msra.mxu0 %v2846_v15  ;;  %1458 = vmatprep.subr.bf16.mxu1 %v2847_v16  ;;  %v2867_v29 = vld [vmem:[#allocation2 + $0x2e4] ss:$16 sps:$4 sm:$0xff]   ;;  %v2870_v31 = vld [vmem:[#allocation2 + $0x2e0] ss:$16 sps:$4 sm:$0xff]   ;;  %v2940_v15 = vld [vmem:[#allocation2 + $0x4c] ss:$16 sps:$4 sm:$0xff]  }
  0x36   :  { %1499 = vmatprep.subr.bf16.mxu0 %v2849_v17  ;;  %v2871_v32 = vld [vmem:[#allocation2 + $0x104] ss:$16 sps:$4 sm:$0xff]   ;;  %v2875_v34 = vld [vmem:[#allocation2 + $0x100] ss:$16 sps:$4 sm:$0xff]   ;;  %v2938_v17 = vld [vmem:[#allocation2 + $0x48] ss:$16 sps:$4 sm:$0xff]  }
  0x37   :  { %v2873_v33 = vld [vmem:[#allocation2 + $0x304] ss:$16 sps:$4 sm:$0xff]   ;;  %v2876_v35 = vld [vmem:[#allocation2 + $0x300] ss:$16 sps:$4 sm:$0xff]  }
  0x38   :  { %1459 = vmatpush1.bf16.msra.mxu1 %v2851_v18  ;;  %v2877_v36 = vld [vmem:[#allocation2 + $0x124] ss:$16 sps:$4 sm:$0xff]   ;;  %v2881_v38 = vld [vmem:[#allocation2 + $0x120] ss:$16 sps:$4 sm:$0xff]  }
  0x39   :  { %1500 = vmatpush1.bf16.msra.mxu0 %v2852_v19  ;;  %1460 = vmatprep.subr.bf16.mxu1 %v2853_v20  ;;  %v2879_v37 = vld [vmem:[#allocation2 + $0x324] ss:$16 sps:$4 sm:$0xff]   ;;  %v2882_v39 = vld [vmem:[#allocation2 + $0x320] ss:$16 sps:$4 sm:$0xff]   ;;  %v2946_v19 = vld [vmem:[#allocation2 + $0x6c] ss:$16 sps:$4 sm:$0xff]  }
  0x3a   :  { %1501 = vmatprep.subr.bf16.mxu0 %v2855_v21  ;;  %v2883_v40 = vld [vmem:[#allocation2 + $0x144] ss:$16 sps:$4 sm:$0xff]   ;;  %v2887_v42 = vld [vmem:[#allocation2 + $0x140] ss:$16 sps:$4 sm:$0xff]   ;;  %v2944_v21 = vld [vmem:[#allocation2 + $0x68] ss:$16 sps:$4 sm:$0xff]  }
  0x3b   :  { %v2885_v41 = vld [vmem:[#allocation2 + $0x344] ss:$16 sps:$4 sm:$0xff]   ;;  %v2888_v43 = vld [vmem:[#allocation2 + $0x340] ss:$16 sps:$4 sm:$0xff]  }
  0x3c   :  { %1461 = vmatpush1.bf16.msra.mxu1 %v2857_v22  ;;  %v2889_v44 = vld [vmem:[#allocation2 + $0x164] ss:$16 sps:$4 sm:$0xff]   ;;  %v2893_v49 = vld [vmem:[#allocation2 + $0x160] ss:$16 sps:$4 sm:$0xff]  }
  0x3d   :  { %1502 = vmatpush1.bf16.msra.mxu0 %v2858_v23  ;;  %1462 = vmatprep.subr.bf16.mxu1 %v2859_v24  ;;  %v2891_v45 = vld [vmem:[#allocation2 + $0x364] ss:$16 sps:$4 sm:$0xff]   ;;  %v2894_v50 = vld [vmem:[#allocation2 + $0x360] ss:$16 sps:$4 sm:$0xff]   ;;  %v2952_v23 = vld [vmem:[#allocation2 + $0x8c] ss:$16 sps:$4 sm:$0xff]  }
  0x3e   :  { %1503 = vmatprep.subr.bf16.mxu0 %v2861_v25  ;;  %v55_v46 = vld [vmem:[%s3669_s0] sm:$0xff]  ;;  %v2950_v25 = vld [vmem:[#allocation2 + $0x88] ss:$16 sps:$4 sm:$0xff]  }
  0x3f   :  { %v3400_v47 = vcombine.high %v55_v46, %v55_v46  ;;  %v2895_v52 = vld [vmem:[#allocation2 + $0x184] ss:$16 sps:$4 sm:$0xff]   ;;  %v2899_v54 = vld [vmem:[#allocation2 + $0x180] ss:$16 sps:$4 sm:$0xff]   ;;  %v3409_v6 = vcombine.low %v55_v46, %v55_v46 }
  0x40   :  { %1463 = vmatpush1.bf16.msra.mxu1 %v2863_v26  ;;  %v2897_v53 = vld [vmem:[#allocation2 + $0x384] ss:$16 sps:$4 sm:$0xff]   ;;  %v2900_v55 = vld [vmem:[#allocation2 + $0x380] ss:$16 sps:$4 sm:$0xff]  }
  0x41   :  { %1504 = vmatpush1.bf16.msra.mxu0 %v2864_v27  ;;  %1464 = vmatprep.subr.bf16.mxu1 %v2865_v28  ;;  %v2901_v56 = vld [vmem:[#allocation2 + $0x1a4] ss:$16 sps:$4 sm:$0xff]   ;;  %v2905_v58 = vld [vmem:[#allocation2 + $0x1a0] ss:$16 sps:$4 sm:$0xff]   ;;  %v2958_v27 = vld [vmem:[#allocation2 + $0xac] ss:$16 sps:$4 sm:$0xff]  }
  0x42   :  { %1505 = vmatprep.subr.bf16.mxu0 %v2867_v29  ;;  %1482 = vmatprep.mubr.bf16.mxu1 %v3400_v47  ;;  %v2903_v57 = vld [vmem:[#allocation2 + $0x3a4] ss:$16 sps:$4 sm:$0xff]   ;;  %v2906_v59 = vld [vmem:[#allocation2 + $0x3a0] ss:$16 sps:$4 sm:$0xff]   ;;  %v2956_v29 = vld [vmem:[#allocation2 + $0xa8] ss:$16 sps:$4 sm:$0xff]  }
  0x43   :  { %v2907_v60 = vld [vmem:[#allocation2 + $0x1c4] ss:$16 sps:$4 sm:$0xff]   ;;  %v2911_v62 = vld [vmem:[#allocation2 + $0x1c0] ss:$16 sps:$4 sm:$0xff]  }
  0x44   :  { %1465 = vmatpush1.bf16.msra.mxu1 %v2869_v30  ;;  %v2909_v61 = vld [vmem:[#allocation2 + $0x3c4] ss:$16 sps:$4 sm:$0xff]   ;;  %v2912_v63 = vld [vmem:[#allocation2 + $0x3c0] ss:$16 sps:$4 sm:$0xff]  }
  0x45   :  { %1506 = vmatpush1.bf16.msra.mxu0 %v2870_v31  ;;  %1466 = vmatprep.subr.bf16.mxu1 %v2871_v32  ;;  %v2913_v0 = vld [vmem:[#allocation2 + $0x1e4] ss:$16 sps:$4 sm:$0xff]   ;;  %v2917_v2 = vld [vmem:[#allocation2 + $0x1e0] ss:$16 sps:$4 sm:$0xff]   ;;  %v2964_v31 = vld [vmem:[#allocation2 + $0xcc] ss:$16 sps:$4 sm:$0xff]  }
  0x46   :  { %1507 = vmatprep.subr.bf16.mxu0 %v2873_v33  ;;  %v2915_v1 = vld [vmem:[#allocation2 + $0x3e4] ss:$16 sps:$4 sm:$0xff]   ;;  %v2918_v3 = vld [vmem:[#allocation2 + $0x3e0] ss:$16 sps:$4 sm:$0xff]  }
  0x47   :  { %v2925_v4 = vld [vmem:[#allocation2 + $0x404] ss:$16 sps:$4 sm:$0xff]   ;;  %v2923_v8 = vld [vmem:[#allocation2 + $0x400] ss:$16 sps:$4 sm:$0xff]  }
  0x48   :  { %1467 = vmatpush1.bf16.msra.mxu1 %v2875_v34  ;;  %v2931_v10 = vld [vmem:[#allocation2 + $0x424] ss:$16 sps:$4 sm:$0xff]   ;;  %v2929_v12 = vld [vmem:[#allocation2 + $0x420] ss:$16 sps:$4 sm:$0xff]  }
  0x49   :  { %1508 = vmatpush1.bf16.msra.mxu0 %v2876_v35  ;;  %1468 = vmatprep.subr.bf16.mxu1 %v2877_v36  ;;  %v2937_v14 = vld [vmem:[#allocation2 + $0x444] ss:$16 sps:$4 sm:$0xff]   ;;  %v2935_v16 = vld [vmem:[#allocation2 + $0x440] ss:$16 sps:$4 sm:$0xff]   ;;  %v2962_v35 = vld [vmem:[#allocation2 + $0xc8] ss:$16 sps:$4 sm:$0xff]  }
  0x4a   :  { %1509 = vmatprep.subr.bf16.mxu0 %v2879_v37  ;;  %v2943_v18 = vld [vmem:[#allocation2 + $0x464] ss:$16 sps:$4 sm:$0xff]   ;;  %v2941_v20 = vld [vmem:[#allocation2 + $0x460] ss:$16 sps:$4 sm:$0xff]   ;;  %v2970_v37 = vld [vmem:[#allocation2 + $0xec] ss:$16 sps:$4 sm:$0xff]  }
  0x4b   :  { %v2949_v22 = vld [vmem:[#allocation2 + $0x484] ss:$16 sps:$4 sm:$0xff]   ;;  %v2947_v24 = vld [vmem:[#allocation2 + $0x480] ss:$16 sps:$4 sm:$0xff]  }
  0x4c   :  { %1469 = vmatpush1.bf16.msra.mxu1 %v2881_v38  ;;  %v2955_v26 = vld [vmem:[#allocation2 + $0x4a4] ss:$16 sps:$4 sm:$0xff]   ;;  %v2953_v28 = vld [vmem:[#allocation2 + $0x4a0] ss:$16 sps:$4 sm:$0xff]  }
  0x4d   :  { %1510 = vmatpush1.bf16.msra.mxu0 %v2882_v39  ;;  %1470 = vmatprep.subr.bf16.mxu1 %v2883_v40  ;;  %v2961_v30 = vld [vmem:[#allocation2 + $0x4c4] ss:$16 sps:$4 sm:$0xff]   ;;  %v2959_v33 = vld [vmem:[#allocation2 + $0x4c0] ss:$16 sps:$4 sm:$0xff]   ;;  %v2968_v39 = vld [vmem:[#allocation2 + $0xe8] ss:$16 sps:$4 sm:$0xff]  }
  0x4e   :  { %1511 = vmatprep.subr.bf16.mxu0 %v2885_v41  ;;  %v3419_v32 = vld [vmem:[%s3669_s0 + $0x10] sm:$0xff]  ;;  %v2976_v41 = vld [vmem:[#allocation2 + $0x10c] ss:$16 sps:$4 sm:$0xff]  }
  0x4f   :  { %v3423_v34 = vcombine.high %v3419_v32, %v3419_v32  ;;  %v2967_v36 = vld [vmem:[#allocation2 + $0x4e4] ss:$16 sps:$4 sm:$0xff]   ;;  %v2965_v38 = vld [vmem:[#allocation2 + $0x4e0] ss:$16 sps:$4 sm:$0xff]  }
  0x50   :  { %1471 = vmatpush1.bf16.msra.mxu1 %v2887_v42  ;;  %v2973_v40 = vld [vmem:[#allocation2 + $0x504] ss:$16 sps:$4 sm:$0xff]   ;;  %v2971_v42 = vld [vmem:[#allocation2 + $0x500] ss:$16 sps:$4 sm:$0xff]  }
  0x51   :  { %1512 = vmatpush1.bf16.msra.mxu0 %v2888_v43  ;;  %1472 = vmatprep.subr.bf16.mxu1 %v2889_v44  ;;  %v2974_v43 = vld [vmem:[#allocation2 + $0x108] ss:$16 sps:$4 sm:$0xff]   ;;  %v2979_v44 = vld [vmem:[#allocation2 + $0x524] ss:$16 sps:$4 sm:$0xff]   ;;  %v2977_v46 = vld [vmem:[#allocation2 + $0x520] ss:$16 sps:$4 sm:$0xff]  }
  0x52   :  { %1513 = vmatprep.subr.bf16.mxu0 %v2891_v45  ;;  %v2982_v45 = vld [vmem:[#allocation2 + $0x12c] ss:$16 sps:$4 sm:$0xff]   ;;  %v2985_v48 = vld [vmem:[#allocation2 + $0x544] ss:$16 sps:$4 sm:$0xff]  }
  0x54   :  { %1473 = vmatpush1.bf16.msra.mxu1 %v2893_v49  ;;  %v2988_v49 = vld [vmem:[#allocation2 + $0x14c] ss:$16 sps:$4 sm:$0xff]  }
  0x55   :  { %1514 = vmatpush1.bf16.msra.mxu0 %v2894_v50  ;;  %1474 = vmatprep.subr.bf16.mxu1 %v2895_v52  ;;  %v2983_v50 = vld [vmem:[#allocation2 + $0x540] ss:$16 sps:$4 sm:$0xff]   ;;  %v2986_v52 = vld [vmem:[#allocation2 + $0x148] ss:$16 sps:$4 sm:$0xff]  }
  0x56   :  { %1515 = vmatprep.subr.bf16.mxu0 %v2897_v53  ;;  %v2991_v53 = vld [vmem:[#allocation2 + $0x564] ss:$16 sps:$4 sm:$0xff]  }
  0x58   :  { %1475 = vmatpush1.bf16.msra.mxu1 %v2899_v54  ;;  %v2994_v54 = vld [vmem:[#allocation2 + $0x16c] ss:$16 sps:$4 sm:$0xff]  }
  0x59   :  { %1516 = vmatpush1.bf16.msra.mxu0 %v2900_v55  ;;  %1476 = vmatprep.subr.bf16.mxu1 %v2901_v56  ;;  %v2989_v55 = vld [vmem:[#allocation2 + $0x560] ss:$16 sps:$4 sm:$0xff]   ;;  %v2992_v56 = vld [vmem:[#allocation2 + $0x168] ss:$16 sps:$4 sm:$0xff]  }
  0x5a   :  { %1517 = vmatprep.subr.bf16.mxu0 %v2903_v57  ;;  %v2997_v57 = vld [vmem:[#allocation2 + $0x584] ss:$16 sps:$4 sm:$0xff]  }
  0x5c   :  { %1477 = vmatpush1.bf16.msra.mxu1 %v2905_v58  ;;  %v3000_v58 = vld [vmem:[#allocation2 + $0x18c] ss:$16 sps:$4 sm:$0xff]  }
  0x5d   :  { %1518 = vmatpush1.bf16.msra.mxu0 %v2906_v59  ;;  %1478 = vmatprep.subr.bf16.mxu1 %v2907_v60  ;;  %v2995_v59 = vld [vmem:[#allocation2 + $0x580] ss:$16 sps:$4 sm:$0xff]   ;;  %v2998_v60 = vld [vmem:[#allocation2 + $0x188] ss:$16 sps:$4 sm:$0xff]  }
  0x5e   :  { %1519 = vmatprep.subr.bf16.mxu0 %v2909_v61  ;;  %v3003_v61 = vld [vmem:[#allocation2 + $0x5a4] ss:$16 sps:$4 sm:$0xff]  }
  0x60   :  { %1479 = vmatpush1.bf16.msra.mxu1 %v2911_v62  ;;  %v3006_v62 = vld [vmem:[#allocation2 + $0x1ac] ss:$16 sps:$4 sm:$0xff]  }
  0x61   :  { %1520 = vmatpush1.bf16.msra.mxu0 %v2912_v63  ;;  %1480 = vmatprep.subr.bf16.mxu1 %v2913_v0  ;;  %v3001_v63 = vld [vmem:[#allocation2 + $0x5a0] ss:$16 sps:$4 sm:$0xff]   ;;  %v3004_v0 = vld [vmem:[#allocation2 + $0x1a8] ss:$16 sps:$4 sm:$0xff]  }
  0x62   :  { %1521 = vmatprep.subr.bf16.mxu0 %v2915_v1  ;;  %v3009_v1 = vld [vmem:[#allocation2 + $0x5c4] ss:$16 sps:$4 sm:$0xff]  }
  0x64   :  { %1481 = vmatpush1.bf16.msra.mxu1 %v2917_v2  ;;  %v3012_v2 = vld [vmem:[#allocation2 + $0x1cc] ss:$16 sps:$4 sm:$0xff]  }
  0x65   :  { %1522 = vmatpush1.bf16.msra.mxu0 %v2918_v3  ;;  %1614 = vmatprep.subr.bf16.mxu1 %v2928_v5  ;;  %v3007_v3 = vld [vmem:[#allocation2 + $0x5c0] ss:$16 sps:$4 sm:$0xff]   ;;  %v3015_v5 = vld [vmem:[#allocation2 + $0x5e4] ss:$16 sps:$4 sm:$0xff]  }
  0x66   :  { %1532 = vmatprep.subr.bf16.mxu0 %v2925_v4  ;;  %v3010_v4 = vld [vmem:[#allocation2 + $0x1c8] ss:$16 sps:$4 sm:$0xff]  }
  0x67   :  { %1483 = vmatmul.mubr.bf16.vlgmr.msra.gmra.mrb[0].mxu1 %v3409_v6 }
  0x68   :  { %1524 = vmatmul.mubr.bf16.vlgmr.msra.gmra.mrb[0].mxu0 %v3411_v7  ;;  %1615 = vmatpush1.bf16.msra.mxu1 %v2926_v9  ;;  %v3013_v9 = vld [vmem:[#allocation2 + $0x5e0] ss:$16 sps:$4 sm:$0xff]  }
  0x69   :  { %1533 = vmatpush1.bf16.msra.mxu0 %v2923_v8  ;;  %1616 = vmatprep.subr.bf16.mxu1 %v2934_v11  ;;  %v3018_v8 = vld [vmem:[#allocation2 + $0x1ec] ss:$16 sps:$4 sm:$0xff]   ;;  %v3023_v11 = vld [vmem:[#allocation2 + $0x604] ss:$16 sps:$4 sm:$0xff]  }
  0x6a   :  { %1534 = vmatprep.subr.bf16.mxu0 %v2931_v10  ;;  %1646 = vmatprep.mubr.bf16.mxu1 %v3400_v47  ;;  %v2980_v47 = vld [vmem:[#allocation2 + $0x128] ss:$16 sps:$4 sm:$0xff]  }
  0x6b   :  { %1564 = vmatprep.mubr.bf16.mxu0 %v3423_v34  ;;  %v3016_v10 = vld [vmem:[#allocation2 + $0x1e8] ss:$16 sps:$4 sm:$0xff]  }
  0x6c   :  { %1617 = vmatpush1.bf16.msra.mxu1 %v2932_v13  ;;  %v3428_v13 = vcombine.low %v3419_v32, %v3419_v32  ;;  %v3056_v32 = vld [vmem:[#allocation2 + $0x2ac] ss:$16 sps:$4 sm:$0xff]  }
  0x6d   :  { %1535 = vmatpush1.bf16.msra.mxu0 %v2929_v12  ;;  %1618 = vmatprep.subr.bf16.mxu1 %v2940_v15  ;;  %v3026_v12 = vld [vmem:[#allocation2 + $0x20c] ss:$16 sps:$4 sm:$0xff]   ;;  %v3024_v15 = vld [vmem:[#allocation2 + $0x208] ss:$16 sps:$4 sm:$0xff]  }
  0x6e   :  { %1536 = vmatprep.subr.bf16.mxu0 %v2937_v14  ;;  %v3021_v14 = vld [vmem:[#allocation2 + $0x600] ss:$16 sps:$4 sm:$0xff]  }
  0x70   :  { %1619 = vmatpush1.bf16.msra.mxu1 %v2938_v17  ;;  %v3032_v17 = vld [vmem:[#allocation2 + $0x22c] ss:$16 sps:$4 sm:$0xff]  }
  0x71   :  { %1537 = vmatpush1.bf16.msra.mxu0 %v2935_v16  ;;  %1620 = vmatprep.subr.bf16.mxu1 %v2946_v19  ;;  %v3029_v16 = vld [vmem:[#allocation2 + $0x624] ss:$16 sps:$4 sm:$0xff]   ;;  %v3030_v19 = vld [vmem:[#allocation2 + $0x228] ss:$16 sps:$4 sm:$0xff]  }
  0x72   :  { %1538 = vmatprep.subr.bf16.mxu0 %v2943_v18  ;;  %v3027_v18 = vld [vmem:[#allocation2 + $0x620] ss:$16 sps:$4 sm:$0xff]  }
  0x74   :  { %1621 = vmatpush1.bf16.msra.mxu1 %v2944_v21  ;;  %v3038_v21 = vld [vmem:[#allocation2 + $0x24c] ss:$16 sps:$4 sm:$0xff]  }
  0x75   :  { %1539 = vmatpush1.bf16.msra.mxu0 %v2941_v20  ;;  %1622 = vmatprep.subr.bf16.mxu1 %v2952_v23  ;;  %v3035_v20 = vld [vmem:[#allocation2 + $0x644] ss:$16 sps:$4 sm:$0xff]   ;;  %v3033_v23 = vld [vmem:[#allocation2 + $0x640] ss:$16 sps:$4 sm:$0xff]  }
  0x76   :  { %1540 = vmatprep.subr.bf16.mxu0 %v2949_v22  ;;  %v3332_v22 = vmov 0  }
  0x78   :  { %1623 = vmatpush1.bf16.msra.mxu1 %v2950_v25  ;;  %v3044_v25 = vld [vmem:[#allocation2 + $0x26c] ss:$16 sps:$4 sm:$0xff]  }
  0x79   :  { %1541 = vmatpush1.bf16.msra.mxu0 %v2947_v24  ;;  %1624 = vmatprep.subr.bf16.mxu1 %v2958_v27  ;;  %v3036_v24 = vld [vmem:[#allocation2 + $0x248] ss:$16 sps:$4 sm:$0xff]  }
  0x7a   :  { %1542 = vmatprep.subr.bf16.mxu0 %v2955_v26  ;;  %v3039_v26 = vld [vmem:[#allocation2 + $0x660] ss:$16 sps:$4 sm:$0xff]   ;;  %v3042_v27 = vld [vmem:[#allocation2 + $0x268] ss:$16 sps:$4 sm:$0xff]  }
  0x7c   :  { %1625 = vmatpush1.bf16.msra.mxu1 %v2956_v29  ;;  %v3050_v29 = vld [vmem:[#allocation2 + $0x28c] ss:$16 sps:$4 sm:$0xff]  }
  0x7d   :  { %1543 = vmatpush1.bf16.msra.mxu0 %v2953_v28  ;;  %1626 = vmatprep.subr.bf16.mxu1 %v2964_v31  ;;  %v3047_v28 = vld [vmem:[#allocation2 + $0x684] ss:$16 sps:$4 sm:$0xff]  }
  0x7e   :  { %1544 = vmatprep.subr.bf16.mxu0 %v2961_v30  ;;  %v3045_v30 = vld [vmem:[#allocation2 + $0x680] ss:$16 sps:$4 sm:$0xff]   ;;  %v3053_v31 = vld [vmem:[#allocation2 + $0x6a4] ss:$16 sps:$4 sm:$0xff]  }
  0x80   :  { %1627 = vmatpush1.bf16.msra.mxu1 %v2962_v35  ;;  %v3054_v35 = vld [vmem:[#allocation2 + $0x2a8] ss:$16 sps:$4 sm:$0xff]  }
  0x81   :  { %1545 = vmatpush1.bf16.msra.mxu0 %v2959_v33  ;;  %1628 = vmatprep.subr.bf16.mxu1 %v2970_v37  ;;  %v3051_v33 = vld [vmem:[#allocation2 + $0x6a0] ss:$16 sps:$4 sm:$0xff]   ;;  %v3062_v37 = vld [vmem:[#allocation2 + $0x2cc] ss:$16 sps:$4 sm:$0xff]  }
  0x82   :  { %1546 = vmatprep.subr.bf16.mxu0 %v2967_v36  ;;  %v3059_v36 = vld [vmem:[#allocation2 + $0x6c4] ss:$16 sps:$4 sm:$0xff]  }
  0x84   :  { %1629 = vmatpush1.bf16.msra.mxu1 %v2968_v39  ;;  %v3060_v39 = vld [vmem:[#allocation2 + $0x2c8] ss:$16 sps:$4 sm:$0xff]  }
  0x85   :  { %1547 = vmatpush1.bf16.msra.mxu0 %v2965_v38  ;;  %1630 = vmatprep.subr.bf16.mxu1 %v2976_v41  ;;  %v3057_v38 = vld [vmem:[#allocation2 + $0x6c0] ss:$16 sps:$4 sm:$0xff]   ;;  %v3068_v41 = vld [vmem:[#allocation2 + $0x2ec] ss:$16 sps:$4 sm:$0xff]  }
  0x86   :  { %1548 = vmatprep.subr.bf16.mxu0 %v2973_v40  ;;  %v3065_v40 = vld [vmem:[#allocation2 + $0x6e4] ss:$16 sps:$4 sm:$0xff]  }
  0x88   :  { %1631 = vmatpush1.bf16.msra.mxu1 %v2974_v43  ;;  %v3066_v43 = vld [vmem:[#allocation2 + $0x2e8] ss:$16 sps:$4 sm:$0xff]  }
  0x89   :  { %1549 = vmatpush1.bf16.msra.mxu0 %v2971_v42  ;;  %1632 = vmatprep.subr.bf16.mxu1 %v2982_v45  ;;  %v3063_v42 = vld [vmem:[#allocation2 + $0x6e0] ss:$16 sps:$4 sm:$0xff]   ;;  %v3437_v45 = vld [vmem:[%s3669_s0 + $0x18] ss:$0 sps:$4 sm:$0xff]  }
  0x8a   :  { %1550 = vmatprep.subr.bf16.mxu0 %v2979_v44  ;;  %v3072_v44 = vld [vmem:[#allocation2 + $0x30c] ss:$16 sps:$4 sm:$0xff]  }
  0x8c   :  { %1633 = vmatpush1.bf16.msra.mxu1 %v2980_v47  ;;  %v3075_v47 = vld [vmem:[#allocation2 + $0x32c] ss:$16 sps:$4 sm:$0xff]  }
  0x8d   :  { %1551 = vmatpush1.bf16.msra.mxu0 %v2977_v46  ;;  %1634 = vmatprep.subr.bf16.mxu1 %v2988_v49  ;;  %v3070_v46 = vld [vmem:[#allocation2 + $0x308] ss:$16 sps:$4 sm:$0xff]   ;;  %v3168_v49 = vld [vmem:[%s3672_s3 + $0x4] ss:$8 sps:$4 sm:$0xff]  }
  0x8e   :  { %1552 = vmatprep.subr.bf16.mxu0 %v2985_v48  ;;  %v3166_v48 = vld [vmem:[%s3672_s3] ss:$8 sps:$4 sm:$0xff]  }
  0x90   :  { %1635 = vmatpush1.bf16.msra.mxu1 %v2986_v52  ;;  %v3171_v52 = vld [vmem:[%s3672_s3 + $0x14] ss:$8 sps:$4 sm:$0xff]  }
  0x91   :  { %1553 = vmatpush1.bf16.msra.mxu0 %v2983_v50  ;;  %1636 = vmatprep.subr.bf16.mxu1 %v2994_v54  ;;  %v3073_v50 = vld [vmem:[#allocation2 + $0x328] ss:$16 sps:$4 sm:$0xff]  }
  0x92   :  { %1554 = vmatprep.subr.bf16.mxu0 %v2991_v53  ;;  %v3078_v53 = vld [vmem:[#allocation2 + $0x34c] ss:$16 sps:$4 sm:$0xff]   ;;  %v3169_v54 = vld [vmem:[%s3672_s3 + $0x10] ss:$8 sps:$4 sm:$0xff]  }
  0x94   :  { %1637 = vmatpush1.bf16.msra.mxu1 %v2992_v56  ;;  %v3076_v56 = vld [vmem:[#allocation2 + $0x348] ss:$16 sps:$4 sm:$0xff]  }
  0x95   :  { %1555 = vmatpush1.bf16.msra.mxu0 %v2989_v55  ;;  %1638 = vmatprep.subr.bf16.mxu1 %v3000_v58  ;;  %v3174_v55 = vld [vmem:[%s3672_s3 + $0x24] ss:$8 sps:$4 sm:$0xff]   ;;  %v3172_v58 = vld [vmem:[%s3672_s3 + $0x20] ss:$8 sps:$4 sm:$0xff]  }
  0x96   :  { %1556 = vmatprep.subr.bf16.mxu0 %v2997_v57  ;;  %v3081_v57 = vld [vmem:[#allocation2 + $0x36c] ss:$16 sps:$4 sm:$0xff]  }
  0x98   :  { %1639 = vmatpush1.bf16.msra.mxu1 %v2998_v60  ;;  %v3084_v60 = vld [vmem:[#allocation2 + $0x38c] ss:$16 sps:$4 sm:$0xff]  }
  0x99   :  { %1557 = vmatpush1.bf16.msra.mxu0 %v2995_v59  ;;  %1640 = vmatprep.subr.bf16.mxu1 %v3006_v62  ;;  %v3079_v59 = vld [vmem:[#allocation2 + $0x368] ss:$16 sps:$4 sm:$0xff]  }
  0x9a   :  { %1558 = vmatprep.subr.bf16.mxu0 %v3003_v61  ;;  %v3177_v61 = vld [vmem:[%s3672_s3 + $0x34] ss:$8 sps:$4 sm:$0xff]   ;;  %v3175_v62 = vld [vmem:[%s3672_s3 + $0x30] ss:$8 sps:$4 sm:$0xff]  }
  0x9c   :  { %1641 = vmatpush1.bf16.msra.mxu1 %v3004_v0  ;;  %v3082_v0 = vld [vmem:[#allocation2 + $0x388] ss:$16 sps:$4 sm:$0xff]  }
  0x9d   :  { %1559 = vmatpush1.bf16.msra.mxu0 %v3001_v63  ;;  %1642 = vmatprep.subr.bf16.mxu1 %v3012_v2  ;;  %v3180_v63 = vld [vmem:[%s3672_s3 + $0x44] ss:$8 sps:$4 sm:$0xff]   ;;  %v3178_v2 = vld [vmem:[%s3672_s3 + $0x40] ss:$8 sps:$4 sm:$0xff]  }
  0x9e   :  { %1560 = vmatprep.subr.bf16.mxu0 %v3009_v1  ;;  %v3087_v1 = vld [vmem:[#allocation2 + $0x3ac] ss:$16 sps:$4 sm:$0xff]  }
  0xa0   :  { %1643 = vmatpush1.bf16.msra.mxu1 %v3010_v4  ;;  %v3085_v4 = vld [vmem:[#allocation2 + $0x3a8] ss:$16 sps:$4 sm:$0xff]  }
  0xa1   :  { %1561 = vmatpush1.bf16.msra.mxu0 %v3007_v3  ;;  %1644 = vmatprep.subr.bf16.mxu1 %v3018_v8  ;;  %v3183_v3 = vld [vmem:[%s3672_s3 + $0x54] ss:$8 sps:$4 sm:$0xff]   ;;  %v3181_v8 = vld [vmem:[%s3672_s3 + $0x50] ss:$8 sps:$4 sm:$0xff]  }
  0xa2   :  { %1562 = vmatprep.subr.bf16.mxu0 %v3015_v5  ;;  %v3090_v5 = vld [vmem:[#allocation2 + $0x3cc] ss:$16 sps:$4 sm:$0xff]  }
  0xa4   :  { %1645 = vmatpush1.bf16.msra.mxu1 %v3016_v10  ;;  %v3088_v10 = vld [vmem:[#allocation2 + $0x3c8] ss:$16 sps:$4 sm:$0xff]  }
  0xa5   :  { %1563 = vmatpush1.bf16.msra.mxu0 %v3013_v9  ;;  %1655 = vmatprep.subr.bf16.mxu1 %v3026_v12  ;;  %v3186_v9 = vld [vmem:[%s3672_s3 + $0x64] ss:$8 sps:$4 sm:$0xff]   ;;  %v3184_v12 = vld [vmem:[%s3672_s3 + $0x60] ss:$8 sps:$4 sm:$0xff]  }
  0xa6   :  { %1573 = vmatprep.subr.bf16.mxu0 %v3023_v11  ;;  %v3093_v11 = vld [vmem:[#allocation2 + $0x3ec] ss:$16 sps:$4 sm:$0xff]  }
  0xa7   :  { %1647 = vmatmul.mubr.bf16.vlgmr.msra.gmra.mrb[4].mxu1 %v3409_v6  ;;  %v3041_v6 = vld [vmem:[#allocation2 + $0x664] ss:$16 sps:$4 sm:$0xff]  }
  0xa8   :  { %1565 = vmatmul.mubr.bf16.vlgmr.msra.gmra.mrb[0].mxu0 %v3428_v13  ;;  %1656 = vmatpush1.bf16.msra.mxu1 %v3024_v15  ;;  %v3091_v15 = vld [vmem:[#allocation2 + $0x3e8] ss:$16 sps:$4 sm:$0xff]  }
  0xa9   :  { %1574 = vmatpush1.bf16.msra.mxu0 %v3021_v14  ;;  %1657 = vmatprep.subr.bf16.mxu1 %v3032_v17  ;;  %v3189_v14 = vld [vmem:[%s3672_s3 + $0x74] ss:$8 sps:$4 sm:$0xff]   ;;  %v3187_v17 = vld [vmem:[%s3672_s3 + $0x70] ss:$8 sps:$4 sm:$0xff]  }
  0xaa   :  { %1575 = vmatprep.subr.bf16.mxu0 %v3029_v16  ;;  %1605 = vmatprep.mubr.bf16.mxu0 %v3332_v22  ;;  %v3096_v16 = vld [vmem:[#allocation2 + $0x40c] ss:$16 sps:$4 sm:$0xff]  }
  0xab   :  { %1687 = vmatprep.mubr.bf16.mxu1 %v3405_v51  ;;  %v3048_v51 = vld [vmem:[#allocation2 + $0x288] ss:$16 sps:$4 sm:$0xff]  }
  0xac   :  { %1658 = vmatpush1.bf16.msra.mxu1 %v3030_v19  ;;  %v3094_v19 = vld [vmem:[#allocation2 + $0x408] ss:$16 sps:$4 sm:$0xff]  }
  0xad   :  { %1576 = vmatpush1.bf16.msra.mxu0 %v3027_v18  ;;  %1659 = vmatprep.subr.bf16.mxu1 %v3038_v21  ;;  %v3192_v18 = vld [vmem:[%s3672_s3 + $0x84] ss:$8 sps:$4 sm:$0xff]   ;;  %v3190_v21 = vld [vmem:[%s3672_s3 + $0x80] ss:$8 sps:$4 sm:$0xff]  }
  0xae   :  { %1577 = vmatprep.subr.bf16.mxu0 %v3035_v20  ;;  %v3099_v20 = vld [vmem:[#allocation2 + $0x42c] ss:$16 sps:$4 sm:$0xff]  }
  0xb0   :  { %1660 = vmatpush1.bf16.msra.mxu1 %v3036_v24  ;;  %v3097_v24 = vld [vmem:[#allocation2 + $0x428] ss:$16 sps:$4 sm:$0xff]  }
  0xb1   :  { %1578 = vmatpush1.bf16.msra.mxu0 %v3033_v23  ;;  %1661 = vmatprep.subr.bf16.mxu1 %v3044_v25  ;;  %v3195_v23 = vld [vmem:[%s3672_s3 + $0x94] ss:$8 sps:$4 sm:$0xff]   ;;  %v3193_v25 = vld [vmem:[%s3672_s3 + $0x90] ss:$8 sps:$4 sm:$0xff]  }
  0xb2   :  { %1579 = vmatprep.subr.bf16.mxu0 %v3041_v6  ;;  %v3102_v6 = vld [vmem:[#allocation2 + $0x44c] ss:$16 sps:$4 sm:$0xff]  }
  0xb4   :  { %1662 = vmatpush1.bf16.msra.mxu1 %v3042_v27  ;;  %v3105_v27 = vld [vmem:[#allocation2 + $0x46c] ss:$16 sps:$4 sm:$0xff]  }
  0xb5   :  { %1580 = vmatpush1.bf16.msra.mxu0 %v3039_v26  ;;  %1663 = vmatprep.subr.bf16.mxu1 %v3050_v29  ;;  %v3100_v26 = vld [vmem:[#allocation2 + $0x448] ss:$16 sps:$4 sm:$0xff]  }
  0xb6   :  { %1581 = vmatprep.subr.bf16.mxu0 %v3047_v28  ;;  %v3201_v28 = vld [vmem:[%s3672_s3 + $0xb4] ss:$8 sps:$4 sm:$0xff]   ;;  %v3103_v29 = vld [vmem:[#allocation2 + $0x468] ss:$16 sps:$4 sm:$0xff]  }
  0xb8   :  { %1664 = vmatpush1.bf16.msra.mxu1 %v3048_v51  ;;  %v3199_v51 = vld [vmem:[%s3672_s3 + $0xb0] ss:$8 sps:$4 sm:$0xff]  }
  0xb9   :  { %1582 = vmatpush1.bf16.msra.mxu0 %v3045_v30  ;;  %1665 = vmatprep.subr.bf16.mxu1 %v3056_v32  ;;  %v3108_v30 = vld [vmem:[#allocation2 + $0x48c] ss:$16 sps:$4 sm:$0xff]   ;;  %v3106_v32 = vld [vmem:[#allocation2 + $0x488] ss:$16 sps:$4 sm:$0xff]  }
  0xba   :  { %1583 = vmatprep.subr.bf16.mxu0 %v3053_v31  ;;  %v3204_v31 = vld [vmem:[%s3672_s3 + $0xc4] ss:$8 sps:$4 sm:$0xff]  }
  0xbc   :  { %1666 = vmatpush1.bf16.msra.mxu1 %v3054_v35  ;;  %v3202_v35 = vld [vmem:[%s3672_s3 + $0xc0] ss:$8 sps:$4 sm:$0xff]  }
  0xbd   :  { %1584 = vmatpush1.bf16.msra.mxu0 %v3051_v33  ;;  %1667 = vmatprep.subr.bf16.mxu1 %v3062_v37  ;;  %v3111_v33 = vld [vmem:[#allocation2 + $0x4ac] ss:$16 sps:$4 sm:$0xff]   ;;  %v3109_v37 = vld [vmem:[#allocation2 + $0x4a8] ss:$16 sps:$4 sm:$0xff]  }
  0xbe   :  { %1585 = vmatprep.subr.bf16.mxu0 %v3059_v36  ;;  %v3207_v36 = vld [vmem:[%s3672_s3 + $0xd4] ss:$8 sps:$4 sm:$0xff]  }
  0xc0   :  { %1668 = vmatpush1.bf16.msra.mxu1 %v3060_v39  ;;  %v3205_v39 = vld [vmem:[%s3672_s3 + $0xd0] ss:$8 sps:$4 sm:$0xff]  }
  0xc1   :  { %1586 = vmatpush1.bf16.msra.mxu0 %v3057_v38  ;;  %1669 = vmatprep.subr.bf16.mxu1 %v3068_v41  ;;  %v3114_v38 = vld [vmem:[#allocation2 + $0x4cc] ss:$16 sps:$4 sm:$0xff]  }
  0xc2   :  { %1587 = vmatprep.subr.bf16.mxu0 %v3065_v40  ;;  %v3112_v40 = vld [vmem:[#allocation2 + $0x4c8] ss:$16 sps:$4 sm:$0xff]   ;;  %v3117_v41 = vld [vmem:[#allocation2 + $0x4ec] ss:$16 sps:$4 sm:$0xff]  }
  0xc4   :  { %1670 = vmatpush1.bf16.msra.mxu1 %v3066_v43  ;;  %v3120_v43 = vld [vmem:[#allocation2 + $0x50c] ss:$16 sps:$4 sm:$0xff]  }
  0xc5   :  { %1588 = vmatpush1.bf16.msra.mxu0 %v3063_v42  ;;  %1671 = vmatprep.subr.bf16.mxu1 %v3072_v44  ;;  %v3115_v42 = vld [vmem:[#allocation2 + $0x4e8] ss:$16 sps:$4 sm:$0xff]  }
  0xc6   :  { %2182 = vmatprep.subr.bf16.mxu0 %v3168_v49  ;;  %v3118_v44 = vld [vmem:[#allocation2 + $0x508] ss:$16 sps:$4 sm:$0xff]  }
  0xc7   :  { %v3124_v49 = vld [vmem:[#allocation2 + $0x548] ss:$16 sps:$4 sm:$0xff]  }
  0xc8   :  { %1606 = vmatmul.mubr.bf16.vlgmr.msra.gmra.mrb[0].mxu0 %v3437_v45  ;;  %1672 = vmatpush1.bf16.msra.mxu1 %v3070_v46  ;;  %v3123_v46 = vld [vmem:[#allocation2 + $0x52c] ss:$16 sps:$4 sm:$0xff]  }
  0xc9   :  { %1673 = vmatprep.subr.bf16.mxu1 %v3075_v47  ;;  %2183 = vmatpush1.bf16.msra.mxu0 %v3166_v48  ;;  %v3121_v47 = vld [vmem:[#allocation2 + $0x528] ss:$16 sps:$4 sm:$0xff]   ;;  %v3126_v48 = vld [vmem:[#allocation2 + $0x54c] ss:$16 sps:$4 sm:$0xff]  }
  0xca   :  { %2184 = vmatprep.subr.bf16.mxu0 %v3171_v52  ;;  %v3127_v52 = vld [vmem:[#allocation2 + $0x568] ss:$16 sps:$4 sm:$0xff]  }
  0xcc   :  { %1674 = vmatpush1.bf16.msra.mxu1 %v3073_v50  ;;  %v3129_v50 = vld [vmem:[#allocation2 + $0x56c] ss:$16 sps:$4 sm:$0xff]  }
  0xcd   :  { %1675 = vmatprep.subr.bf16.mxu1 %v3078_v53  ;;  %2185 = vmatpush1.bf16.msra.mxu0 %v3169_v54  ;;  %v3132_v53 = vld [vmem:[#allocation2 + $0x58c] ss:$16 sps:$4 sm:$0xff]   ;;  %v3130_v54 = vld [vmem:[#allocation2 + $0x588] ss:$16 sps:$4 sm:$0xff]  }
  0xce   :  { %2186 = vmatprep.subr.bf16.mxu0 %v3174_v55  ;;  %v3135_v55 = vld [vmem:[#allocation2 + $0x5ac] ss:$16 sps:$4 sm:$0xff]  }
  0xd0   :  { %1676 = vmatpush1.bf16.msra.mxu1 %v3076_v56  ;;  %v3133_v56 = vld [vmem:[#allocation2 + $0x5a8] ss:$16 sps:$4 sm:$0xff]  }
  0xd1   :  { %1677 = vmatprep.subr.bf16.mxu1 %v3081_v57  ;;  %2187 = vmatpush1.bf16.msra.mxu0 %v3172_v58  ;;  %v3138_v57 = vld [vmem:[#allocation2 + $0x5cc] ss:$16 sps:$4 sm:$0xff]  }
  0xd2   :  { %2188 = vmatprep.subr.bf16.mxu0 %v3177_v61  ;;  %v3210_v58 = vld [vmem:[%s3672_s3 + $0xe4] ss:$8 sps:$4 sm:$0xff]  }
  0xd3   :  { %v3141_v61 = vld [vmem:[#allocation2 + $0x5ec] ss:$16 sps:$4 sm:$0xff]  }
  0xd4   :  { %1678 = vmatpush1.bf16.msra.mxu1 %v3079_v59  ;;  %v3208_v59 = vld [vmem:[%s3672_s3 + $0xe0] ss:$8 sps:$4 sm:$0xff]  }
  0xd5   :  { %1679 = vmatprep.subr.bf16.mxu1 %v3084_v60  ;;  %2189 = vmatpush1.bf16.msra.mxu0 %v3175_v62  ;;  %v3136_v60 = vld [vmem:[#allocation2 + $0x5c8] ss:$16 sps:$4 sm:$0xff]   ;;  %v3213_v62 = vld [vmem:[%s3672_s3 + $0xf4] ss:$8 sps:$4 sm:$0xff]  }
  0xd6   :  { %2190 = vmatprep.subr.bf16.mxu0 %v3180_v63  ;;  %v3211_v63 = vld [vmem:[%s3672_s3 + $0xf0] ss:$8 sps:$4 sm:$0xff]  }
  0xd8   :  { %1680 = vmatpush1.bf16.msra.mxu1 %v3082_v0  ;;  %v3139_v0 = vld [vmem:[#allocation2 + $0x5e8] ss:$16 sps:$4 sm:$0xff]  }
  0xd9   :  { %1681 = vmatprep.subr.bf16.mxu1 %v3087_v1  ;;  %2191 = vmatpush1.bf16.msra.mxu0 %v3178_v2  ;;  %v3144_v1 = vld [vmem:[#allocation2 + $0x60c] ss:$16 sps:$4 sm:$0xff]  }
  0xda   :  { %2192 = vmatprep.subr.bf16.mxu0 %v3183_v3  ;;  %v3216_v2 = vld [vmem:[%s3672_s3 + $0x104] ss:$8 sps:$4 sm:$0xff]   ;;  %v3142_v3 = vld [vmem:[#allocation2 + $0x608] ss:$16 sps:$4 sm:$0xff]  }
  0xdc   :  { %1682 = vmatpush1.bf16.msra.mxu1 %v3085_v4  ;;  %v3147_v4 = vld [vmem:[#allocation2 + $0x62c] ss:$16 sps:$4 sm:$0xff]  }
  0xdd   :  { %1683 = vmatprep.subr.bf16.mxu1 %v3090_v5  ;;  %2193 = vmatpush1.bf16.msra.mxu0 %v3181_v8  ;;  %v3145_v5 = vld [vmem:[#allocation2 + $0x628] ss:$16 sps:$4 sm:$0xff]   ;;  %v3150_v8 = vld [vmem:[#allocation2 + $0x64c] ss:$16 sps:$4 sm:$0xff]  }
  0xde   :  { %2194 = vmatprep.subr.bf16.mxu0 %v3186_v9  ;;  %v3148_v9 = vld [vmem:[#allocation2 + $0x648] ss:$16 sps:$4 sm:$0xff]  }
  0xe0   :  { %1684 = vmatpush1.bf16.msra.mxu1 %v3088_v10  ;;  %v3153_v10 = vld [vmem:[#allocation2 + $0x66c] ss:$16 sps:$4 sm:$0xff]  }
  0xe1   :  { %1685 = vmatprep.subr.bf16.mxu1 %v3093_v11  ;;  %2195 = vmatpush1.bf16.msra.mxu0 %v3184_v12  ;;  %v3151_v11 = vld [vmem:[#allocation2 + $0x668] ss:$16 sps:$4 sm:$0xff]   ;;  %v3156_v12 = vld [vmem:[#allocation2 + $0x68c] ss:$16 sps:$4 sm:$0xff]  }
  0xe2   :  { %2196 = vmatprep.subr.bf16.mxu0 %v3189_v14  ;;  %v3154_v14 = vld [vmem:[#allocation2 + $0x688] ss:$16 sps:$4 sm:$0xff]  }
  0xe4   :  { %1686 = vmatpush1.bf16.msra.mxu1 %v3091_v15  ;;  %v3159_v15 = vld [vmem:[#allocation2 + $0x6ac] ss:$16 sps:$4 sm:$0xff]  }
  0xe5   :  { %1696 = vmatprep.subr.bf16.mxu1 %v3096_v16  ;;  %2197 = vmatpush1.bf16.msra.mxu0 %v3187_v17  ;;  %v3162_v16 = vld [vmem:[#allocation2 + $0x6cc] ss:$16 sps:$4 sm:$0xff]  }
  0xe6   :  { %2198 = vmatprep.subr.bf16.mxu0 %v3192_v18 }
  0xe7   :  { %1688 = vmatmul.mubr.bf16.vlgmr.msra.gmra.mrb[4].mxu1 %v3411_v7  ;;  %v3198_v7 = vld [vmem:[%s3672_s3 + $0xa4] ss:$8 sps:$4 sm:$0xff]  }
  0xe8   :  { %1697 = vmatpush1.bf16.msra.mxu1 %v3094_v19  ;;  %1728 = vmatprep.mubr.bf16.mxu1 %v3423_v34  ;;  %v3196_v34 = vld [vmem:[%s3672_s3 + $0xa0] ss:$8 sps:$4 sm:$0xff]  }
  0xe9   :  { %1698 = vmatprep.subr.bf16.mxu1 %v3099_v20  ;;  %2199 = vmatpush1.bf16.msra.mxu0 %v3190_v21  ;;  %v3160_v19 = vld [vmem:[#allocation2 + $0x6c8] ss:$16 sps:$4 sm:$0xff]   ;;  %v3165_v21 = vld [vmem:[#allocation2 + $0x6ec] ss:$16 sps:$4 sm:$0xff]  }
  0xea   :  { %2200 = vmatprep.subr.bf16.mxu0 %v3195_v23  ;;  %v3163_v23 = vld [vmem:[#allocation2 + $0x6e8] ss:$16 sps:$4 sm:$0xff]  }
  0xec   :  { %1699 = vmatpush1.bf16.msra.mxu1 %v3097_v24  ;;  %v285_v24 = vlaneseq }
  0xed   :  { %1700 = vmatprep.subr.bf16.mxu1 %v3102_v6  ;;  %2201 = vmatpush1.bf16.msra.mxu0 %v3193_v25 }
  0xee   :  { %2202 = vmatprep.subr.bf16.mxu0 %v3198_v7  ;;  %v3544_v6 = vshrl.u32 %v285_v24, 7  ;;  %v3550_v7 = vld [vmem:[%s3671_s2] sm:$0xf] }
  0xf0   :  { %1701 = vmatpush1.bf16.msra.mxu1 %v3100_v26  ;;  %v287_v25 = vsub.s32 0, %v3544_v6  ;;  %v291_v26 = vsub.s32 1, %v3544_v6 }
  0xf1   :  { %1702 = vmatprep.subr.bf16.mxu1 %v3105_v27  ;;  %2203 = vmatpush1.bf16.msra.mxu0 %v3196_v34 }
  0xf2   :  { %2204 = vmatprep.subr.bf16.mxu0 %v3201_v28  ;;  %v288_v27 = vrot.slane %v3550_v7, %v287_v25 }
  0xf4   :  { %1703 = vmatpush1.bf16.msra.mxu1 %v3103_v29 }
  0xf5   :  { %1704 = vmatprep.subr.bf16.mxu1 %v3108_v30  ;;  %2205 = vmatpush1.bf16.msra.mxu0 %v3199_v51 }
  0xf6   :  { %2206 = vmatprep.subr.bf16.mxu0 %v3204_v31 }
  0xf8   :  { %1705 = vmatpush1.bf16.msra.mxu1 %v3106_v32 }
  0xf9   :  { %1706 = vmatprep.subr.bf16.mxu1 %v3111_v33  ;;  %2207 = vmatpush1.bf16.msra.mxu0 %v3202_v35 }
  0xfa   :  { %2208 = vmatprep.subr.bf16.mxu0 %v3207_v36 }
  0xfc   :  { %1707 = vmatpush1.bf16.msra.mxu1 %v3109_v37 }
  0xfd   :  { %1708 = vmatprep.subr.bf16.mxu1 %v3114_v38  ;;  %2209 = vmatpush1.bf16.msra.mxu0 %v3205_v39  ;;  %v3214_v38 = vld [vmem:[%s3672_s3 + $0x100] ss:$8 sps:$4 sm:$0xff]  }
  0xfe   :  { %2210 = vmatprep.subr.bf16.mxu0 %v3210_v58  ;;  %v3226_v58 = vld [vmem:[%s3672_s3 + $0x140] ss:$8 sps:$4 sm:$0xff]  }
 0x100   :  { %1709 = vmatpush1.bf16.msra.mxu1 %v3112_v40  ;;  %v3219_v40 = vld [vmem:[%s3672_s3 + $0x114] ss:$8 sps:$4 sm:$0xff]  }
 0x101   :  { %1710 = vmatprep.subr.bf16.mxu1 %v3117_v41  ;;  %2211 = vmatpush1.bf16.msra.mxu0 %v3208_v59  ;;  %v3262_v41 = vld [vmem:[#allocation4 + $0x40] sm:$0xff]   ;;  %v3231_v59 = vld [vmem:[%s3672_s3 + $0x154] ss:$8 sps:$4 sm:$0xff]  }
 0x102   :  { %2212 = vmatprep.subr.bf16.mxu0 %v3213_v62  ;;  %v3229_v62 = vld [vmem:[%s3672_s3 + $0x150] ss:$8 sps:$4 sm:$0xff]  }
 0x104   :  { %1711 = vmatpush1.bf16.msra.mxu1 %v3115_v42  ;;  %v3263_v42 = vld [vmem:[#allocation4] sm:$0xff]  }
 0x105   :  { %1712 = vmatprep.subr.bf16.mxu1 %v3120_v43  ;;  %2213 = vmatpush1.bf16.msra.mxu0 %v3211_v63  ;;  %v3264_v43 = vld [vmem:[#allocation4 + $0x48] sm:$0xff]  }
 0x106   :  { %2223 = vmatprep.subr.bf16.mxu0 %v3216_v2  ;;  %v3234_v63 = vld [vmem:[%s3672_s3 + $0x164] ss:$8 sps:$4 sm:$0xff]   ;;  %v3237_v2 = vld [vmem:[%s3672_s3 + $0x174] ss:$8 sps:$4 sm:$0xff]  }
 0x108   :  { %1713 = vmatpush1.bf16.msra.mxu1 %v3118_v44  ;;  %v3217_v44 = vld [vmem:[%s3672_s3 + $0x110] ss:$8 sps:$4 sm:$0xff]  }
 0x109   :  { %1714 = vmatprep.subr.bf16.mxu1 %v3123_v46  ;;  %v3222_v46 = vld [vmem:[%s3672_s3 + $0x124] ss:$8 sps:$4 sm:$0xff]  }
 0x10c   :  { %1715 = vmatpush1.bf16.msra.mxu1 %v3121_v47  ;;  %v3265_v47 = vld [vmem:[#allocation4 + $0x8] sm:$0xff]  }
 0x10d   :  { %1716 = vmatprep.subr.bf16.mxu1 %v3126_v48  ;;  %v3266_v48 = vld [vmem:[#allocation4 + $0x50] sm:$0xff]  }
 0x110   :  { %1717 = vmatpush1.bf16.msra.mxu1 %v3124_v49  ;;  %v3220_v49 = vld [vmem:[%s3672_s3 + $0x120] ss:$8 sps:$4 sm:$0xff]  }
 0x111   :  { %1718 = vmatprep.subr.bf16.mxu1 %v3129_v50  ;;  %v3225_v50 = vld [vmem:[%s3672_s3 + $0x134] ss:$8 sps:$4 sm:$0xff]  }
 0x114   :  { %1719 = vmatpush1.bf16.msra.mxu1 %v3127_v52  ;;  %v3267_v52 = vld [vmem:[#allocation4 + $0x10] sm:$0xff]  }
 0x115   :  { %1720 = vmatprep.subr.bf16.mxu1 %v3132_v53  ;;  %v3268_v53 = vld [vmem:[#allocation4 + $0x58] sm:$0xff]  }
 0x118   :  { %1721 = vmatpush1.bf16.msra.mxu1 %v3130_v54  ;;  %v3223_v54 = vld [vmem:[%s3672_s3 + $0x130] ss:$8 sps:$4 sm:$0xff]  }
 0x119   :  { %1722 = vmatprep.subr.bf16.mxu1 %v3135_v55  ;;  %v3228_v55 = vld [vmem:[%s3672_s3 + $0x144] ss:$8 sps:$4 sm:$0xff]  }
 0x11c   :  { %1723 = vmatpush1.bf16.msra.mxu1 %v3133_v56  ;;  %v3269_v56 = vld [vmem:[#allocation4 + $0x18] sm:$0xff]  }
 0x11d   :  { %1724 = vmatprep.subr.bf16.mxu1 %v3138_v57  ;;  %v3270_v57 = vld [vmem:[#allocation4 + $0x60] sm:$0xff]  }
 0x120   :  { %1725 = vmatpush1.bf16.msra.mxu1 %v3136_v60  ;;  %v3271_v60 = vld [vmem:[#allocation4 + $0x20] sm:$0xff]  }
 0x121   :  { %1726 = vmatprep.subr.bf16.mxu1 %v3141_v61  ;;  %v3272_v61 = vld [vmem:[#allocation4 + $0x68] sm:$0xff]  }
 0x124   :  { %1727 = vmatpush1.bf16.msra.mxu1 %v3139_v0  ;;  %v3273_v0 = vld [vmem:[#allocation4 + $0x28] sm:$0xff]  }
 0x125   :  { %1737 = vmatprep.subr.bf16.mxu1 %v3144_v1  ;;  %v3232_v1 = vld [vmem:[%s3672_s3 + $0x160] ss:$8 sps:$4 sm:$0xff]  }
 0x127   :  { %1729 = vmatmul.mubr.bf16.vlgmr.msra.gmra.mrb[4].mxu1 %v3428_v13  ;;  %v3157_v13 = vld [vmem:[#allocation2 + $0x6a8] ss:$16 sps:$4 sm:$0xff]  }
 0x128   :  { %1738 = vmatpush1.bf16.msra.mxu1 %v3142_v3  ;;  %1769 = vmatprep.mubr.bf16.mxu1 %v3332_v22  ;;  %v3235_v3 = vld [vmem:[%s3672_s3 + $0x170] ss:$8 sps:$4 sm:$0xff]  }
 0x129   :  { %1739 = vmatprep.subr.bf16.mxu1 %v3147_v4  ;;  %v3240_v4 = vld [vmem:[%s3672_s3 + $0x184] ss:$8 sps:$4 sm:$0xff]  }
 0x12c   :  { %1740 = vmatpush1.bf16.msra.mxu1 %v3145_v5  ;;  %v3238_v5 = vld [vmem:[%s3672_s3 + $0x180] ss:$8 sps:$4 sm:$0xff]  }
 0x12d   :  { %1741 = vmatprep.subr.bf16.mxu1 %v3150_v8  ;;  %v3243_v8 = vld [vmem:[%s3672_s3 + $0x194] ss:$8 sps:$4 sm:$0xff]  }
 0x130   :  { %1742 = vmatpush1.bf16.msra.mxu1 %v3148_v9  ;;  %v3241_v9 = vld [vmem:[%s3672_s3 + $0x190] ss:$8 sps:$4 sm:$0xff]  }
 0x131   :  { %1743 = vmatprep.subr.bf16.mxu1 %v3153_v10  ;;  %v3246_v10 = vld [vmem:[%s3672_s3 + $0x1a4] ss:$8 sps:$4 sm:$0xff]  }
 0x134   :  { %1744 = vmatpush1.bf16.msra.mxu1 %v3151_v11  ;;  %v3244_v11 = vld [vmem:[%s3672_s3 + $0x1a0] ss:$8 sps:$4 sm:$0xff]  }
 0x135   :  { %1745 = vmatprep.subr.bf16.mxu1 %v3156_v12  ;;  %v3249_v12 = vld [vmem:[%s3672_s3 + $0x1b4] ss:$8 sps:$4 sm:$0xff]  }
 0x138   :  { %1746 = vmatpush1.bf16.msra.mxu1 %v3154_v14  ;;  %v3247_v14 = vld [vmem:[%s3672_s3 + $0x1b0] ss:$8 sps:$4 sm:$0xff]  }
 0x139   :  { %1747 = vmatprep.subr.bf16.mxu1 %v3159_v15  ;;  %v3252_v15 = vld [vmem:[%s3672_s3 + $0x1c4] ss:$8 sps:$4 sm:$0xff]  }
 0x13a   :  { %v1484_v17 = vpop.f32.mrb[0].mxu1 }
 0x13b   :  { %v1486_v22 = vpop.f32.mrb[1].mxu1  ;;  %v1485_v34 = vadd.f32 %v1484_v17, %v288_v27  ;;  %v3253_v17 = vld [vmem:[%s3672_s3 + $0x1d0] ss:$8 sps:$4 sm:$0xff]  }
 0x13c   :  { %v1488_v18 = vpop.f32.mrb[2].mxu1  ;;  %1748 = vmatpush1.bf16.msra.mxu1 %v3157_v13  ;;  %v3250_v13 = vld [vmem:[%s3672_s3 + $0x1c0] ss:$8 sps:$4 sm:$0xff]  }
 0x13d   :  { %v1489_v20 = vpop.f32.mrb[3].mxu1  ;;  %1749 = vmatprep.subr.bf16.mxu1 %v3162_v16  ;;  %v3255_v16 = vld [vmem:[%s3672_s3 + $0x1d4] ss:$8 sps:$4 sm:$0xff]   ;;  %v3256_v18 = vld [vmem:[%s3672_s3 + $0x1e0] ss:$8 sps:$4 sm:$0xff]  }
 0x13e   :  { %v3259_v20 = vld [vmem:[%s3672_s3 + $0x1f0] ss:$8 sps:$4 sm:$0xff]  }
 0x140   :  { %1750 = vmatpush1.bf16.msra.mxu1 %v3160_v19  ;;  %v3261_v19 = vld [vmem:[%s3672_s3 + $0x1f4] ss:$8 sps:$4 sm:$0xff]  }
 0x141   :  { %1751 = vmatprep.subr.bf16.mxu1 %v3165_v21  ;;  %v295_v21 = vsub.s32 2, %v3544_v6 }
 0x143   :  { %v296_v24 = vrot.slane %v3550_v7, %v295_v21 }
 0x144   :  { %1752 = vmatpush1.bf16.msra.mxu1 %v3163_v23  ;;  %v299_v23 = vsub.s32 3, %v3544_v6 }
 0x145   :  { %2762 = vmatprep.subr.bf16.mxu1 %v3262_v41 }
 0x146   :  { %v300_v27 = vrot.slane %v3550_v7, %v299_v23 }
 0x147   :  { %1770 = vmatmul.mubr.bf16.vlgmr.msra.gmra.mrb[4].mxu1 %v3437_v45  ;;  %v292_v45 = vrot.slane %v3550_v7, %v291_v26  ;;  %v1850_v7 = vld [vmem:[%s3673_s4] sm:$0x3] }
 0x148   :  { %2763 = vmatpush3.bf16.msra.mxu1 %v3263_v42  ;;  %v1859_v41 = vrot.slane %v1850_v7, %v291_v26 }
 0x149   :  { %v1487_v28 = vadd.f32 %v1486_v22, %v292_v45  ;;  %2764 = vmatprep.subr.bf16.mxu1 %v3264_v43  ;;  %v3258_v22 = vld [vmem:[%s3672_s3 + $0x1e4] ss:$8 sps:$4 sm:$0xff]  }
 0x14c   :  { %2765 = vmatpush3.bf16.msra.mxu1 %v3265_v47 }
 0x14d   :  { %2766 = vmatprep.subr.bf16.mxu1 %v3266_v48 }
 0x150   :  { %2767 = vmatpush3.bf16.msra.mxu1 %v3267_v52 }
 0x151   :  { %2768 = vmatprep.subr.bf16.mxu1 %v3268_v53 }
 0x154   :  { %2769 = vmatpush3.bf16.msra.mxu1 %v3269_v56 }
 0x155   :  { %2770 = vmatprep.subr.bf16.mxu1 %v3270_v57 }
 0x158   :  { %2771 = vmatpush3.bf16.msra.mxu1 %v3271_v60 }
 0x159   :  { %2772 = vmatprep.subr.bf16.mxu1 %v3272_v61 }
 0x15c   :  { %2773 = vmatpush3.bf16.msra.mxu1 %v3273_v0 }
 0x19b   :  { %v1607_v29 = vpop.f32.mrb[0].mxu0 }
 0x19c   :  { %v2785_v30 = vadd.f32 %v1607_v29, %v1485_v34  ;;  %v1609_v51 = vpop.f32.mrb[1].mxu0 }
 0x19d   :  { %v2787_v31 = vadd.f32 %v1609_v51, %v1487_v28  ;;  %v1611_v32 = vpop.f32.mrb[2].mxu0 }
 0x19e   :  { %v1778_v33 = vmax.f32 %v2785_v30, 0.0  ;;  %v1612_v35 = vpop.f32.mrb[3].mxu0 }
 0x19f   :  { %v1779_v36 = vmax.f32 %v2787_v31, 0.0 }
 0x1a0   :  { %v1782_v39 = vpack.c.bf16 %v1778_v33, %v1778_v33 }
 0x1a1   :  { %v1783_v37 = vpack.c.bf16 %v1779_v36, %v1779_v36  ;;  %v3274_v36 = vld [vmem:[#allocation4 + $0x70] sm:$0xff]  }
 0x1a2   :  { %2774 = vmatprep.subr.bf16.mxu1 %v3274_v36 }
 0x1a3   :  { %2214 = vmatprep.mubr.bf16.mxu0 %v1783_v37  ;;  %v3275_v37 = vld [vmem:[#allocation4 + $0x30] sm:$0xff]  }
 0x1a4   :  { %2215 = vmatmul.mubr.bf16.vlgmr.msra.gmra.mrb[4].mxu0 %v1782_v39  ;;  %2775 = vmatpush3.bf16.msra.mxu1 %v3275_v37  ;;  %v3277_v39 = vld [vmem:[#allocation4 + $0x38] sm:$0xff]  }
 0x1a5   :  { %2224 = vmatpush1.bf16.msra.mxu0 %v3214_v38  ;;  %v3276_v38 = vld [vmem:[#allocation4 + $0x78] sm:$0xff]  }
 0x1a6   :  { %2225 = vmatprep.subr.bf16.mxu0 %v3219_v40  ;;  %2776 = vmatprep.subr.bf16.mxu1 %v3276_v38  ;;  %v1855_v40 = vrot.slane %v1850_v7, %v287_v25  ;;  %v2745_v25 = vld [vmem:[%s3675_s6] ss:$0 sm:$0xff] }
 0x1a8   :  { %2777 = vmatpush3.bf16.msra.mxu1 %v3277_v39 }
 0x1a9   :  { %2226 = vmatpush1.bf16.msra.mxu0 %v3217_v44 }
 0x1aa   :  { %2227 = vmatprep.subr.bf16.mxu0 %v3222_v46 }
 0x1ad   :  { %2228 = vmatpush1.bf16.msra.mxu0 %v3220_v49 }
 0x1ae   :  { %2229 = vmatprep.subr.bf16.mxu0 %v3225_v50 }
 0x1b1   :  { %2230 = vmatpush1.bf16.msra.mxu0 %v3223_v54 }
 0x1b2   :  { %2231 = vmatprep.subr.bf16.mxu0 %v3228_v55 }
 0x1b5   :  { %2232 = vmatpush1.bf16.msra.mxu0 %v3226_v58 }
 0x1b6   :  { %2233 = vmatprep.subr.bf16.mxu0 %v3231_v59 }
 0x1b9   :  { %2234 = vmatpush1.bf16.msra.mxu0 %v3229_v62 }
 0x1ba   :  { %2235 = vmatprep.subr.bf16.mxu0 %v3234_v63 }
 0x1bd   :  { %2236 = vmatpush1.bf16.msra.mxu0 %v3232_v1 }
 0x1be   :  { %2237 = vmatprep.subr.bf16.mxu0 %v3237_v2 }
 0x1c1   :  { %2238 = vmatpush1.bf16.msra.mxu0 %v3235_v3 }
 0x1c2   :  { %2239 = vmatprep.subr.bf16.mxu0 %v3240_v4 }
 0x1c5   :  { %2240 = vmatpush1.bf16.msra.mxu0 %v3238_v5 }
 0x1c6   :  { %2241 = vmatprep.subr.bf16.mxu0 %v3243_v8 }
 0x1c9   :  { %2242 = vmatpush1.bf16.msra.mxu0 %v3241_v9 }
 0x1ca   :  { %2243 = vmatprep.subr.bf16.mxu0 %v3246_v10 }
 0x1cd   :  { %2244 = vmatpush1.bf16.msra.mxu0 %v3244_v11 }
 0x1ce   :  { %2245 = vmatprep.subr.bf16.mxu0 %v3249_v12 }
 0x1d1   :  { %2246 = vmatpush1.bf16.msra.mxu0 %v3247_v14 }
 0x1d2   :  { %2247 = vmatprep.subr.bf16.mxu0 %v3252_v15 }
 0x1d5   :  { %2248 = vmatpush1.bf16.msra.mxu0 %v3250_v13 }
 0x1d6   :  { %2249 = vmatprep.subr.bf16.mxu0 %v3255_v16 }
 0x1d9   :  { %2250 = vmatpush1.bf16.msra.mxu0 %v3253_v17 }
 0x1da   :  { %2251 = vmatprep.subr.bf16.mxu0 %v3258_v22 }
 0x1dd   :  { %2252 = vmatpush1.bf16.msra.mxu0 %v3256_v18 }
 0x1de   :  { %2253 = vmatprep.subr.bf16.mxu0 %v3261_v19 }
 0x1e1   :  { %2254 = vmatpush1.bf16.msra.mxu0 %v3259_v20 }
 0x21a   :  { %v1771_v45 = vpop.f32.mrb[4].mxu1 }
 0x21b   :  { %v2788_v34 = vadd.f32 %v1771_v45, %v296_v24  ;;  %v1773_v28 = vpop.f32.mrb[5].mxu1 }
 0x21c   :  { %v2789_v29 = vadd.f32 %v1773_v28, %v300_v27  ;;  %v1775_v30 = vpop.f32.mrb[6].mxu1 }
 0x21d   :  { %v1780_v51 = vmax.f32 %v2788_v34, 0.0  ;;  %v1776_v31 = vpop.f32.mrb[7].mxu1 }
 0x21e   :  { %v1781_v32 = vmax.f32 %v2789_v29, 0.0 }
 0x21f   :  { %v1784_v35 = vpack.c.bf16 %v1780_v51, %v1780_v51 }
 0x220   :  { %v1785_v33 = vpack.c.bf16 %v1781_v32, %v1781_v32 }
 0x222   :  { %2255 = vmatprep.mubr.bf16.mxu0 %v1785_v33 }
 0x223   :  { %2256 = vmatmul.mubr.bf16.vlgmr.msra.gmra.mrb[4].mxu0 %v1784_v35 }
 0x2f6   :  { %v2257_v42 = vpop.f32.mrb[4].mxu0 }
 0x2f7   :  { %v2790_v43 = vadd.f32 %v2257_v42, %v1855_v40  ;;  %v2259_v44 = vpop.f32.mrb[5].mxu0 }
 0x2f8   :  { %v2791_v46 = vadd.f32 %v2259_v44, %v1859_v41  ;;  %v2261_v47 = vpop.f32.mrb[6].mxu0 }
 0x2f9   :  { %v2264_v48 = vmax.f32 %v2790_v43, 0.0  ;;  %v2262_v49 = vpop.f32.mrb[7].mxu0 }
 0x2fa   :  { %v2265_v50 = vmax.f32 %v2791_v46, 0.0 }
 0x2fb   :  { %v2266_v53 = vpack.c.bf16 %v2264_v48, %v2264_v48 }
 0x2fc   :  { %v2267_v52 = vpack.c.bf16 %v2265_v50, %v2265_v50 }
 0x2fe   :  { %2435 = vmatprep.mubr.bf16.mxu1 %v2267_v52 }
 0x2ff   :  { %2436 = vmatmul.mubr.bf16.vlgmr.msra.gmra.mrb[8].mxu1 %v2266_v53 }
 0x3d2   :  { %v2778_v54 = vpop.f32.mrb[8].mxu1 }
 0x3d3   :  { %v2779_v55 = vpop.f32.mrb[9].mxu1 }
 0x3d4   :  { %v2780_v6 = vadd.f32 %v2779_v55, %v2778_v54  ;;  %v2781_v26 = vpop.f32.mrb[10].mxu1 }
 0x3d5   :  { %v2782_v56 = vpop.f32.mrb[11].mxu1 }
 0x3d6   :  { %v2438_v57 = vadd.f32 %v2780_v6, %v2745_v25 }
 0x3d8   :  { %2443 = vst [vmem:[%s3676_s7] sm:$0xff] %v2438_v57 }
 0x3d9   :  { %2448 = vsyncpa [#allocation3], 1 }
 0x3da   :  { %2449 = vsyncpa [#allocation5], 1 }

</bundles_post_ra>
